<compile_context>
chip_gen: v7x
topology: tpu7x:2x2x1
jax: 0.10.0
libtpu: 0.0.40
codegen_flags: <defaults>
</compile_context>

<pallas_src>
import functools

import jax
import jax.numpy as jnp
import numpy as np
from jax import lax
from jax.experimental import pallas as pl
from jax.experimental.pallas import tpu as pltpu

EPS = 1e-12
POWER_ITERATIONS = 1


def _power_iter_kernel(w_ref, u_ref, v_ref, wn_ref, u_out_ref, v_out_ref):
    """Power iteration + sigma + normalized weight.  Single block, runs once.

    w_ref:  (OC, CKK)  w_bar viewed as 2-D
    u_ref:  (1, OC)    left singular-vector estimate
    v_ref:  (1, CKK)   right singular-vector estimate
    wn_ref: (OC, CKK)  output: w_bar / sigma
    """
    w = w_ref[...].astype(jnp.float32)
    u = u_ref[...].astype(jnp.float32)
    v = v_ref[...].astype(jnp.float32)

    # (1, OC) . (OC, CKK)  contract u dim1 with w dim0 -> (1, CKK)
    dn_u_w = (((1,), (0,)), ((), ()))
    # (1, CKK) . (OC, CKK) contract v dim1 with w dim1 -> (1, OC)  (no w.T materialized)
    dn_v_w = (((1,), (1,)), ((), ()))

    wv = u  # placeholder; POWER_ITERATIONS >= 1 always overwrites it
    for _ in range(POWER_ITERATIONS):
        wtu = lax.dot_general(u, w, dn_u_w, preferred_element_type=jnp.float32)
        v = wtu * (1.0 / (jnp.sqrt(jnp.sum(wtu * wtu)) + EPS))
        wv = lax.dot_general(v, w, dn_v_w, preferred_element_type=jnp.float32)
        u = wv * (1.0 / (jnp.sqrt(jnp.sum(wv * wv)) + EPS))

    # sigma = u . (W v); wv from the last loop iteration is exactly W @ v_final.
    sigma = jnp.sum(u * wv)

    wn_ref[...] = (w * (1.0 / sigma)).astype(wn_ref.dtype)
    u_out_ref[...] = u.astype(u_out_ref.dtype)
    v_out_ref[...] = v.astype(v_out_ref.dtype)


def _conv_matmul_kernel(wn_ref, b_ref, p_ref, out_ref):
    """One M-tile of the conv-as-matmul.

    wn_ref:  (OC, CKK)      normalized weight (same block every grid step)
    b_ref:   (OC, 1)        conv bias
    p_ref:   (CKK, TILE_M)  im2col patches tile (lane dim = M -> lane dense)
    out_ref: (OC, TILE_M)   output tile (lane dense -> unmasked stores)
    """
    acc = lax.dot_general(
        wn_ref[...], p_ref[...],
        dimension_numbers=(((1,), (0,)), ((), ())),
        preferred_element_type=jnp.float32)                 # (OC, TILE_M)
    out_ref[...] = (acc + b_ref[...]).astype(out_ref.dtype)


@functools.partial(jax.jit, static_argnames=("padding", "tile_m"))
def spectral_norm_conv2d(x, w_bar, bias, u, v, *, padding=1, tile_m=256):
    """x: (N, C, H, W). w_bar: (OC, C, KH, KW). bias: (OC,). u: (OC,). v: (C*KH*KW,).

    Returns (y_NCHW, u_new, v_new) matching the PyTorch SpectralNorm(Conv2d) forward.
    """
    N, C, H, W = x.shape
    OC, _, KH, KW = w_bar.shape
    OH = H + 2 * padding - KH + 1
    OW = W + 2 * padding - KW + 1
    CKK = C * KH * KW
    M = N * OH * OW

    # ---- kernel 1: power iteration + sigma + w_bar / sigma (runs once) ----
    w_mat = w_bar.reshape(OC, CKK).astype(jnp.float32)
    u2 = u.reshape(1, OC).astype(jnp.float32)
    v2 = v.reshape(1, CKK).astype(jnp.float32)

    w_norm, u_new, v_new = pl.pallas_call(
        _power_iter_kernel,
        out_shape=(
            jax.ShapeDtypeStruct((OC, CKK), jnp.float32),
            jax.ShapeDtypeStruct((1, OC), jnp.float32),
            jax.ShapeDtypeStruct((1, CKK), jnp.float32),
        ),
        grid=(1,),
        in_specs=[
            pl.BlockSpec((OC, CKK), lambda i: (0, 0)),
            pl.BlockSpec((1, OC), lambda i: (0, 0)),
            pl.BlockSpec((1, CKK), lambda i: (0, 0)),
        ],
        out_specs=(
            pl.BlockSpec((OC, CKK), lambda i: (0, 0)),
            pl.BlockSpec((1, OC), lambda i: (0, 0)),
            pl.BlockSpec((1, CKK), lambda i: (0, 0)),
        ),
        compiler_params=pltpu.CompilerParams(
            dimension_semantics=("arbitrary",)),
    )(w_mat, u2, v2)

    # ---- glue: im2col built directly in (CKK, M) layout (lane dim = M) ----
    # TODO(synk): fuse patch extraction into the matmul kernel to avoid the
    # KH*KW-fold HBM duplication of x; kept inside this jit for now.
    x_pad = jnp.pad(x, ((0, 0), (0, 0), (padding, padding), (padding, padding)))
    cols = jnp.stack(
        [x_pad[:, :, kh:kh + OH, kw:kw + OW]
         for kh in range(KH) for kw in range(KW)],
        axis=2,
    )                                                        # (N, C, KH*KW, OH, OW)
    # row index = c*KH*KW + kh*KW + kw (matches w.view(OC, -1)); col = n*OH*OW + oh*OW + ow
    patches = cols.transpose(1, 2, 0, 3, 4).reshape(CKK, M).astype(jnp.float32)

    # Pad M up to a multiple of the tile so every output block is full & lane dense.
    tile_m = min(tile_m, max(128, M))
    n_tiles = pl.cdiv(M, tile_m)
    m_pad = n_tiles * tile_m
    if m_pad != M:
        patches = jnp.pad(patches, ((0, 0), (0, m_pad - M)))

    b2 = bias.reshape(OC, 1).astype(jnp.float32)

    out_flat = pl.pallas_call(
        _conv_matmul_kernel,
        out_shape=jax.ShapeDtypeStruct((OC, m_pad), jnp.float32),
        grid=(n_tiles,),
        in_specs=[
            pl.BlockSpec((OC, CKK), lambda i: (0, 0)),       # w_norm: resident
            pl.BlockSpec((OC, 1), lambda i: (0, 0)),         # bias:   resident
            pl.BlockSpec((CKK, tile_m), lambda i: (0, i)),   # patches: tiled over M
        ],
        out_specs=pl.BlockSpec((OC, tile_m), lambda i: (0, i)),
        compiler_params=pltpu.CompilerParams(
            dimension_semantics=("parallel",)),
    )(w_norm, b2, patches)

    # (OC, M) -> (OC, N, OH, OW) -> NCHW (cheap leading-dim swap)
    y = out_flat[:, :M].reshape(OC, N, OH, OW).transpose(1, 0, 2, 3)
    return y, u_new.reshape(OC), v_new.reshape(CKK)


def _reference(x, w_bar, bias, u, v, padding=1):
    """Pure-JAX reference matching the PyTorch module."""
    OC = w_bar.shape[0]
    w_mat = w_bar.reshape(OC, -1)
    for _ in range(POWER_ITERATIONS):
        v = w_mat.T @ u
        v = v / (jnp.linalg.norm(v) + EPS)
        u = w_mat @ v
        u = u / (jnp.linalg.norm(u) + EPS)
    sigma = u @ (w_mat @ v)
    w = w_bar / sigma
    y = lax.conv_general_dilated(
        x, w, window_strides=(1, 1), padding=[(padding, padding)] * 2,
        dimension_numbers=("NCHW", "OIHW", "NCHW"))
    return y + bias.reshape(1, OC, 1, 1), u, v


if __name__ == "__main__":
    key = jax.random.PRNGKey(0)
    k_x, k_w, k_b, k_u, k_v = jax.random.split(key, 5)

    N, C, H, W = 2, 4, 16, 16
    OC, KH, KW = 8, 3, 3
    CKK = C * KH * KW

    x = jax.random.normal(k_x, (N, C, H, W), dtype=jnp.float32)
    w_bar = jax.random.normal(k_w, (OC, C, KH, KW), dtype=jnp.float32) * 0.1
    bias = jax.random.normal(k_b, (OC,), dtype=jnp.float32) * 0.1
    # u, v initialized N(0,1) then l2-normalized, as in _make_params()
    u0 = jax.random.normal(k_u, (OC,), dtype=jnp.float32)
    v0 = jax.random.normal(k_v, (CKK,), dtype=jnp.float32)
    u0 = u0 / (jnp.linalg.norm(u0) + EPS)
    v0 = v0 / (jnp.linalg.norm(v0) + EPS)

    y, u_new, v_new = spectral_norm_conv2d(x, w_bar, bias, u0, v0,
                                           padding=1, tile_m=256)
    y = jax.block_until_ready(y)

    y_ref, u_ref, v_ref = _reference(x, w_bar, bias, u0, v0, padding=1)
    np.testing.assert_allclose(np.asarray(y), np.asarray(y_ref), rtol=1e-4, atol=1e-4)
    np.testing.assert_allclose(np.asarray(u_new), np.asarray(u_ref), rtol=1e-4, atol=1e-5)
    np.testing.assert_allclose(np.asarray(v_new), np.asarray(v_ref), rtol=1e-4, atol=1e-5)

    print("KERNEL_OK")
</pallas_src>

<mosaic_0001>
module attributes {stable_mosaic.version = 11 : i64} {
  func.func @_power_iter_kernel(%arg0: i32, %arg1: memref<8x36xf32, #tpu.memory_space<vmem>>, %arg2: memref<1x8xf32, #tpu.memory_space<vmem>>, %arg3: memref<1x36xf32, #tpu.memory_space<vmem>>, %arg4: memref<8x36xf32, #tpu.memory_space<vmem>>, %arg5: memref<1x8xf32, #tpu.memory_space<vmem>>, %arg6: memref<1x36xf32, #tpu.memory_space<vmem>>) attributes {dimension_semantics = [#tpu.dimension_semantics<arbitrary>], iteration_bounds = array<i64: 1>, scalar_prefetch = 0 : i64, scratch_operands = 0 : i64, tpu.core_type = #tpu.core_type<tc>, window_params = [{pipeline_mode = #tpu.pipeline_mode<synchronous>, transform_indices = @transform_0, window_bounds = array<i64: 8, 36>}, {pipeline_mode = #tpu.pipeline_mode<synchronous>, transform_indices = @transform_1, window_bounds = array<i64: 1, 8>}, {pipeline_mode = #tpu.pipeline_mode<synchronous>, transform_indices = @transform_2, window_bounds = array<i64: 1, 36>}, {pipeline_mode = #tpu.pipeline_mode<synchronous>, transform_indices = @transform_3, window_bounds = array<i64: 8, 36>}, {pipeline_mode = #tpu.pipeline_mode<synchronous>, transform_indices = @transform_4, window_bounds = array<i64: 1, 8>}, {pipeline_mode = #tpu.pipeline_mode<synchronous>, transform_indices = @transform_5, window_bounds = array<i64: 1, 36>}]} {
    %c0 = arith.constant 0 : index
    %c0_0 = arith.constant 0 : index
    %0 = vector.load %arg1[%c0, %c0_0] : memref<8x36xf32, #tpu.memory_space<vmem>>, vector<8x36xf32>
    %c0_1 = arith.constant 0 : index
    %c0_2 = arith.constant 0 : index
    %1 = vector.load %arg2[%c0_1, %c0_2] : memref<1x8xf32, #tpu.memory_space<vmem>>, vector<1x8xf32>
    %cst = arith.constant dense<0.000000e+00> : vector<1x36xf32>
    %2 = tpu.matmul %1, %0, %cst {dimension_numbers = #tpu.dot_dimension_numbers<[1], [0], [0], [1], [0, 0, 1, 1], [], []>} : vector<1x8xf32>, vector<8x36xf32>, vector<1x36xf32> -> vector<1x36xf32>
    %3 = arith.mulf %2, %2 : vector<1x36xf32>
    %4 = vector.shape_cast %3 : vector<1x36xf32> to vector<1x1x36xf32>
    %cst_3 = arith.constant dense<0.000000e+00> : vector<1xf32>
    %5 = vector.multi_reduction <add>, %4, %cst_3 [1, 2] : vector<1x1x36xf32> to vector<1xf32>
    %6 = vector.shape_cast %5 : vector<1xf32> to vector<1x1x1xf32>
    %7 = vector.extract %6[0, 0, 0] : f32 from vector<1x1x1xf32>
    %8 = math.sqrt %7 : f32
    %cst_4 = arith.constant 9.99999996E-13 : f32
    %9 = arith.addf %8, %cst_4 : f32
    %cst_5 = arith.constant 1.000000e+00 : f32
    %10 = arith.divf %cst_5, %9 : f32
    %11 = vector.broadcast %10 : f32 to vector<1x36xf32>
    %12 = arith.mulf %2, %11 : vector<1x36xf32>
    %cst_6 = arith.constant dense<0.000000e+00> : vector<1x8xf32>
    %13 = tpu.matmul %12, %0, %cst_6 {dimension_numbers = #tpu.dot_dimension_numbers<[1], [1], [0], [0], [0, 0, 1, 0], [], []>} : vector<1x36xf32>, vector<8x36xf32>, vector<1x8xf32> -> vector<1x8xf32>
    %14 = arith.mulf %13, %13 : vector<1x8xf32>
    %15 = vector.shape_cast %14 : vector<1x8xf32> to vector<1x1x8xf32>
    %cst_7 = arith.constant dense<0.000000e+00> : vector<1xf32>
    %16 = vector.multi_reduction <add>, %15, %cst_7 [1, 2] : vector<1x1x8xf32> to vector<1xf32>
    %17 = vector.shape_cast %16 : vector<1xf32> to vector<1x1x1xf32>
    %18 = vector.extract %17[0, 0, 0] : f32 from vector<1x1x1xf32>
    %19 = math.sqrt %18 : f32
    %cst_8 = arith.constant 9.99999996E-13 : f32
    %20 = arith.addf %19, %cst_8 : f32
    %cst_9 = arith.constant 1.000000e+00 : f32
    %21 = arith.divf %cst_9, %20 : f32
    %22 = vector.broadcast %21 : f32 to vector<1x8xf32>
    %23 = arith.mulf %13, %22 : vector<1x8xf32>
    %24 = arith.mulf %23, %13 : vector<1x8xf32>
    %25 = vector.shape_cast %24 : vector<1x8xf32> to vector<1x1x8xf32>
    %cst_10 = arith.constant dense<0.000000e+00> : vector<1xf32>
    %26 = vector.multi_reduction <add>, %25, %cst_10 [1, 2] : vector<1x1x8xf32> to vector<1xf32>
    %27 = vector.shape_cast %26 : vector<1xf32> to vector<1x1x1xf32>
    %28 = vector.extract %27[0, 0, 0] : f32 from vector<1x1x1xf32>
    %cst_11 = arith.constant 1.000000e+00 : f32
    %29 = arith.divf %cst_11, %28 : f32
    %30 = vector.broadcast %29 : f32 to vector<8x36xf32>
    %31 = arith.mulf %0, %30 : vector<8x36xf32>
    %c0_12 = arith.constant 0 : index
    %c0_13 = arith.constant 0 : index
    %32 = vector.load %arg4[%c0_12, %c0_13] : memref<8x36xf32, #tpu.memory_space<vmem>>, vector<8x36xf32>
    tpu.vector_store %arg4[%c0_12, %c0_13], %31 {strides = array<i32>} : memref<8x36xf32, #tpu.memory_space<vmem>>, vector<8x36xf32>,
    %c0_14 = arith.constant 0 : index
    %c0_15 = arith.constant 0 : index
    %33 = vector.load %arg5[%c0_14, %c0_15] : memref<1x8xf32, #tpu.memory_space<vmem>>, vector<1x8xf32>
    tpu.vector_store %arg5[%c0_14, %c0_15], %23 {strides = array<i32>} : memref<1x8xf32, #tpu.memory_space<vmem>>, vector<1x8xf32>,
    %c0_16 = arith.constant 0 : index
    %c0_17 = arith.constant 0 : index
    %34 = vector.load %arg6[%c0_16, %c0_17] : memref<1x36xf32, #tpu.memory_space<vmem>>, vector<1x36xf32>
    tpu.vector_store %arg6[%c0_16, %c0_17], %12 {strides = array<i32>} : memref<1x36xf32, #tpu.memory_space<vmem>>, vector<1x36xf32>,
    return
  }
  func.func @transform_0(%arg0: i32) -> (i32, i32) {
    %c0_i32 = arith.constant 0 : i32
    %c0_i32_0 = arith.constant 0 : i32
    %c0_i32_1 = arith.constant 0 : i32
    return %c0_i32, %c0_i32_0 : i32, i32
  }
  func.func @transform_1(%arg0: i32) -> (i32, i32) {
    %c0_i32 = arith.constant 0 : i32
    %c0_i32_0 = arith.constant 0 : i32
    %c0_i32_1 = arith.constant 0 : i32
    return %c0_i32, %c0_i32_0 : i32, i32
  }
  func.func @transform_2(%arg0: i32) -> (i32, i32) {
    %c0_i32 = arith.constant 0 : i32
    %c0_i32_0 = arith.constant 0 : i32
    %c0_i32_1 = arith.constant 0 : i32
    return %c0_i32, %c0_i32_0 : i32, i32
  }
  func.func @transform_3(%arg0: i32) -> (i32, i32) {
    %c0_i32 = arith.constant 0 : i32
    %c0_i32_0 = arith.constant 0 : i32
    %c0_i32_1 = arith.constant 0 : i32
    return %c0_i32, %c0_i32_0 : i32, i32
  }
  func.func @transform_4(%arg0: i32) -> (i32, i32) {
    %c0_i32 = arith.constant 0 : i32
    %c0_i32_0 = arith.constant 0 : i32
    %c0_i32_1 = arith.constant 0 : i32
    return %c0_i32, %c0_i32_0 : i32, i32
  }
  func.func @transform_5(%arg0: i32) -> (i32, i32) {
    %c0_i32 = arith.constant 0 : i32
    %c0_i32_0 = arith.constant 0 : i32
    %c0_i32_1 = arith.constant 0 : i32
    return %c0_i32, %c0_i32_0 : i32, i32
  }
}

module attributes {stable_mosaic.version = 11 : i64} {
  func.func @_conv_matmul_kernel(%arg0: i32, %arg1: memref<8x36xf32, #tpu.memory_space<vmem>>, %arg2: memref<8x1xf32, #tpu.memory_space<vmem>>, %arg3: memref<36x256xf32, #tpu.memory_space<vmem>>, %arg4: memref<8x256xf32, #tpu.memory_space<vmem>>) attributes {dimension_semantics = [#tpu.dimension_semantics<parallel>], iteration_bounds = array<i64: 2>, scalar_prefetch = 0 : i64, scratch_operands = 0 : i64, tpu.core_type = #tpu.core_type<tc>, window_params = [{pipeline_mode = #tpu.pipeline_mode<synchronous>, transform_indices = @transform_0, window_bounds = array<i64: 8, 36>}, {pipeline_mode = #tpu.pipeline_mode<synchronous>, transform_indices = @transform_1, window_bounds = array<i64: 8, 1>}, {transform_indices = @transform_2, window_bounds = array<i64: 36, 256>}, {transform_indices = @transform_3, window_bounds = array<i64: 8, 256>}]} {
    %c0 = arith.constant 0 : index
    %c0_0 = arith.constant 0 : index
    %0 = vector.load %arg1[%c0, %c0_0] : memref<8x36xf32, #tpu.memory_space<vmem>>, vector<8x36xf32>
    %c0_1 = arith.constant 0 : index
    %c0_2 = arith.constant 0 : index
    %1 = vector.load %arg3[%c0_1, %c0_2] : memref<36x256xf32, #tpu.memory_space<vmem>>, vector<36x256xf32>
    %cst = arith.constant dense<0.000000e+00> : vector<8x256xf32>
    %2 = tpu.matmul %0, %1, %cst {dimension_numbers = #tpu.dot_dimension_numbers<[1], [0], [0], [1], [0, 0, 1, 1], [], []>} : vector<8x36xf32>, vector<36x256xf32>, vector<8x256xf32> -> vector<8x256xf32>
    %c0_3 = arith.constant 0 : index
    %c0_4 = arith.constant 0 : index
    %3 = vector.load %arg2[%c0_3, %c0_4] : memref<8x1xf32, #tpu.memory_space<vmem>>, vector<8x1xf32>
    %4 = vector.broadcast %3 : vector<8x1xf32> to vector<8x256xf32>
    %5 = arith.addf %2, %4 : vector<8x256xf32>
    %c0_5 = arith.constant 0 : index
    %c0_6 = arith.constant 0 : index
    %6 = vector.load %arg4[%c0_5, %c0_6] : memref<8x256xf32, #tpu.memory_space<vmem>>, vector<8x256xf32>
    tpu.vector_store %arg4[%c0_5, %c0_6], %5 {strides = array<i32>} : memref<8x256xf32, #tpu.memory_space<vmem>>, vector<8x256xf32>,
    return
  }
  func.func @transform_0(%arg0: i32) -> (i32, i32) {
    %c0_i32 = arith.constant 0 : i32
    %c0_i32_0 = arith.constant 0 : i32
    %c0_i32_1 = arith.constant 0 : i32
    return %c0_i32, %c0_i32_0 : i32, i32
  }
  func.func @transform_1(%arg0: i32) -> (i32, i32) {
    %c0_i32 = arith.constant 0 : i32
    %c0_i32_0 = arith.constant 0 : i32
    %c0_i32_1 = arith.constant 0 : i32
    return %c0_i32, %c0_i32_0 : i32, i32
  }
  func.func @transform_2(%arg0: i32) -> (i32, i32) {
    %c0_i32 = arith.constant 0 : i32
    %c0_i32_0 = arith.constant 0 : i32
    return %c0_i32, %arg0 : i32, i32
  }
  func.func @transform_3(%arg0: i32) -> (i32, i32) {
    %c0_i32 = arith.constant 0 : i32
    %c0_i32_0 = arith.constant 0 : i32
    return %c0_i32, %arg0 : i32, i32
  }
}

</mosaic_0001>

<bundles_post_ra>
// kernel: spectral_norm_conv2d.2
= control target key start
LH: loop header
LB: loop body
LE: loop exit
PB: predicated region body
PF: predicated region fallthrough
CT: control target
= control target key end

     0   :  { %11 = vsyncpa [#allocation3], 0  ;;  %vm21_vm0 = vcmask 64512   ;;  %v372_v2 = vmov 0.0   ;;  %vm373_vm1 = vmmov 0   ;;  %s460_s0 = inlined_call_operand.vmem [shape: f32[8,36], index: 0, kind: input, shape index: {}]   ;;  %s461_s1 = inlined_call_operand.vmem [shape: f32[1,8], index: 1, kind: input, shape index: {}]   ;;  %s462_s2 = inlined_call_operand.vmem [shape: f32[1,36], index: 2, kind: input, shape index: {}]   ;;  %s463_s3 = inlined_call_operand.vmem [shape: f32[8,36], index: 3, kind: output, shape index: {0}]   ;;  %s464_s4 = inlined_call_operand.hbm [shape: f32[1,8], index: 4, kind: output, shape index: {1}]   ;;  %s465_s5 = inlined_call_operand.hbm [shape: f32[1,36], index: 5, kind: output, shape index: {2}]  }
   0x1   :  { %v409_v0 = vld [vmem:[%s460_s0] sm:$0xff]  ;;  %284 = vmatprep.subr.mxu0 %v372_v2  ;;  %286 = vmatprep.mubr.msk.f32.mxu0 %vm373_vm1, %v372_v2 }
   0x2   :  { %v20_v1 = vld [vmem:[%s461_s1] sm:$0x1] }
   0x3   :  { %12 = vsyncpa [#allocation5], 0  ;;  %285 = vmatpush3.msra.mxu0 %v409_v0  ;;  %289 = vmatprep.subr.mxu1 %v372_v2  ;;  %vm96_vm2 = vcmask 286720   ;;  %vm122_vm3 = vcmask 293888   ;;  %vm200_vm6 = vcmask 57344   ;;  %s374_s27 = smov [#allocation2]  }
   0x4   :  { %287 = vmatmul.mubr.msk.f32.vlgmr.msra.gmra.mrb[0].mxu0 %vm21_vm0, %v20_v1  ;;  %291 = vmatprep.mubr.msk.f32.mxu1 %vm373_vm1, %v372_v2  ;;  %s253_s28 = sshll.u32 %s374_s27, 4  ;;  %s375_s29 = smov [#allocation4]   ;;  %s254_s28 = int_to_ptr.vmem [resolvable:$true] %s253_s28 }
   0x5   :  { %290 = vmatpush3.xpose.msk.msra.mxu1 %vm122_vm3, %v409_v0  ;;  %s263_s30 = sshll.u32 %s375_s29, 4  ;;  %s324_s6 = scalar_lea.vmem %s254_s28, 16  ;;  %s423_s30 = int_to_ptr.vmem [resolvable:$true] %s263_s30 }
   0x6   :  { %p325_p0 = scmp.ne.s32.totalorder %s254_s28, %s324_s6  ;;  %s328_s7 = scalar_lea.vmem %s254_s28, 32 }
   0x7   :  { %p329_p1 = scmp.lt.s32.totalorder %s254_s28, %s254_s28  ;;  %p330_p2 = scmp.lt.s32.totalorder %s328_s7, %s324_s6 }
   0x9   :  { %p331_p3 = por %p330_p2, %p329_p1 }
   0xb   :  { %p332_p4 = pnand %p331_p3, %p325_p0 }
  0xd7   :  { %v91_v3 = vpop.f32.mrb[0].mxu0 }
  0xd8   :  { %v288_v4 = vpop.f32.mrb[1].mxu0  ;;  %v95_v5 = vmul.f32 %v91_v3, %v91_v3 }
  0xda   :  { %v97_v6 = vsel %vm96_vm2, %v95_v5, 0.0 }
  0xdb   :  { %98 = vadd.xlane.f32.xlu0 %v97_v6 }
 0x168   :  { %v99_v7 = vpop.xlane.xlu0 %98 }
 0x169   :  { %v100_v8 = vrot.slane %v99_v7, 4 }
 0x16b   :  { %v101_v9 = vadd.f32 %v100_v8, %v99_v7 }
 0x16d   :  { %v102_v10 = vrot.slane %v101_v9, 2 }
 0x16f   :  { %v103_v11 = vadd.f32 %v102_v10, %v101_v9 }
 0x171   :  { %v104_v12 = vrot.slane %v103_v11, 1 }
 0x173   :  { %v105_v13 = vadd.f32 %v104_v12, %v103_v11 }
 0x175   :  { %294 = vpush %v105_v13 }
 0x1a6   :  { %s295_s0 = spop %294 }
 0x1a7   :  { %v107_v14 = vstv %s295_s0 }
 0x1a8   :  { %314 = vrsqrt.f32 %v107_v14  ;;  %vm110_vm4 = vcmp.eq.f32.partialorder %v107_v14, inf  ;;  %v113_v17 = vand.u32 2147483648, %v107_v14  ;;  %vm112_vm5 = vcmp.eq.f32.partialorder %v107_v14, 0.0 }
 0x1b2   :  { %v315_v15 = vpop.eup %314 }
 0x1b3   :  { %v109_v16 = vmul.f32 %v315_v15, %v107_v14 }
 0x1b5   :  { %v111_v18 = vsel %vm110_vm4, %v107_v14, %v109_v16 }
 0x1b6   :  { %v114_v19 = vsel %vm112_vm5, %v113_v17, %v111_v18 }
 0x1b7   :  { %296 = vpush %v114_v19 }
 0x1e8   :  { %s297_s1 = spop %296 }
 0x1e9   :  { %s116_s2 = sadd.f32 1e-12, %s297_s1 }
 0x1eb   :  { %v117_v20 = vstv %s116_s2 }
 0x1ec   :  { %316 = vrcp.f32 %v117_v20 }
 0x1f6   :  { %v317_v21 = vpop.eup %316 }
 0x1f7   :  { %298 = vpush %v317_v21 }
 0x228   :  { %s299_s22 = spop %298 }
 0x229   :  { %v120_v22 = vstv %s299_s22 }
 0x22a   :  { %v121_v23 = vmul.f32 %v120_v22, %v91_v3 }
 0x22c   :  { %244 = vst.msk [vmem:[#allocation4] sm:$0x1] %vm96_vm2, %v121_v23  ;;  %292 = vmatmul.mubr.msk.f32.vlgmr.msra.gmra.mrb[0].mxu1 %vm122_vm3, %v121_v23 }
 0x2ff   :  { %v195_v24 = vpop.f32.mrb[0].mxu1 }
 0x300   :  { %v293_v25 = vpop.f32.mrb[1].mxu1  ;;  %v199_v26 = vmul.f32 %v195_v24, %v195_v24 }
 0x302   :  { %v201_v27 = vsel %vm200_vm6, %v199_v26, 0.0 }
 0x303   :  { %202 = vadd.xlane.f32.xlu0 %v201_v27 }
 0x390   :  { %v203_v28 = vpop.xlane.xlu0 %202 }
 0x391   :  { %v204_v29 = vrot.slane %v203_v28, 4 }
 0x393   :  { %v205_v30 = vadd.f32 %v204_v29, %v203_v28 }
 0x395   :  { %v206_v31 = vrot.slane %v205_v30, 2 }
 0x397   :  { %v207_v32 = vadd.f32 %v206_v31, %v205_v30 }
 0x399   :  { %v208_v33 = vrot.slane %v207_v32, 1 }
 0x39b   :  { %v209_v34 = vadd.f32 %v208_v33, %v207_v32 }
 0x39d   :  { %300 = vpush %v209_v34 }
 0x3ce   :  { %s301_s23 = spop %300 }
 0x3cf   :  { %v211_v35 = vstv %s301_s23 }
 0x3d0   :  { %318 = vrsqrt.f32 %v211_v35  ;;  %vm214_vm7 = vcmp.eq.f32.partialorder %v211_v35, inf  ;;  %v217_v38 = vand.u32 2147483648, %v211_v35  ;;  %vm216_vm8 = vcmp.eq.f32.partialorder %v211_v35, 0.0 }
 0x3da   :  { %v319_v36 = vpop.eup %318 }
 0x3db   :  { %v213_v37 = vmul.f32 %v319_v36, %v211_v35 }
 0x3dd   :  { %v215_v39 = vsel %vm214_vm7, %v211_v35, %v213_v37 }
 0x3de   :  { %v218_v40 = vsel %vm216_vm8, %v217_v38, %v215_v39 }
 0x3df   :  { %302 = vpush %v218_v40 }
 0x410   :  { %s303_s24 = spop %302 }
 0x411   :  { %s220_s25 = sadd.f32 1e-12, %s303_s24 }
 0x413   :  { %v221_v41 = vstv %s220_s25 }
 0x414   :  { %320 = vrcp.f32 %v221_v41 }
 0x41e   :  { %v321_v42 = vpop.eup %320 }
 0x41f   :  { %304 = vpush %v321_v42 }
 0x450   :  { %s305_s26 = spop %304 }
 0x451   :  { %v224_v43 = vstv %s305_s26 }
 0x452   :  { %v225_v44 = vmul.f32 %v224_v43, %v195_v24 }
 0x454   :  { %243 = vst.msk [vmem:[#allocation2] sm:$0x1] %vm200_vm6, %v225_v44  ;;  %v226_v45 = vmul.f32 %v225_v44, %v195_v24 }
 0x456   :  { %v227_v46 = vsel %vm200_vm6, %v226_v45, 0.0 }
 0x457   :  { %228 = vadd.xlane.f32.xlu1 %v227_v46 }
 0x4e4   :  { %v229_v47 = vpop.xlane.xlu1 %228 }
 0x4e5   :  { %335 = shalt.err (!%p332_p4)
}
 0x4e6   :  { %s336_s10 = scalar_lea.hbm %s464_s4, 16 }
 0x4e7   :  { %p337_p5 = scmp.ne.s32.totalorder %s464_s4, %s336_s10  ;;  %p340_p6 = scmp.lt.u32.totalorder %s336_s10, %s464_s4 }
 0x4e9   :  { %p342_p7 = pnand %p340_p6, %p337_p5 }
 0x4eb   :  { %345 = shalt.err (!%p342_p7)
}
 0x4ec   :  { %256 = dma.vmem_to_hbm [thread:$0]  %s254_s28, 16, %s464_s4, [#allocation3]   ;;  %v230_v48 = vrot.slane %v229_v47, 4 }
 0x4ed   :  { %s346_s17 = scalar_lea.vmem %s423_s30, 16  ;;  %s350_s18 = scalar_lea.vmem %s423_s30, 32 }
 0x4ee   :  { %p347_p8 = scmp.ne.s32.totalorder %s423_s30, %s346_s17  ;;  %p351_p9 = scmp.lt.s32.totalorder %s423_s30, %s423_s30 }
 0x4ef   :  { %p352_p10 = scmp.lt.s32.totalorder %s350_s18, %s346_s17 }
 0x4f1   :  { %p353_p11 = por %p352_p10, %p351_p9 }
 0x4f3   :  { %p354_p12 = pnand %p353_p11, %p347_p8 }
 0x4f5   :  { %357 = shalt.err (!%p354_p12)
}
 0x4f6   :  { %s358_s21 = scalar_lea.hbm %s465_s5, 16 }
 0x4f7   :  { %p359_p13 = scmp.ne.s32.totalorder %s465_s5, %s358_s21  ;;  %p362_p0 = scmp.lt.u32.totalorder %s358_s21, %s465_s5 }
 0x4f9   :  { %p364_p1 = pnand %p362_p0, %p359_p13 }
 0x4fb   :  { %367 = shalt.err (!%p364_p1)
}
 0x4fc   :  { %266 = dma.vmem_to_hbm [thread:$0]  %s423_s30, 16, %s465_s5, [#allocation5]   ;;  %v231_v49 = vadd.f32 %v230_v48, %v229_v47 }
 0x4fe   :  { %v232_v50 = vrot.slane %v231_v49, 2 }
 0x500   :  { %v233_v51 = vadd.f32 %v232_v50, %v231_v49 }
 0x502   :  { %v234_v52 = vrot.slane %v233_v51, 1 }
 0x504   :  { %v235_v53 = vadd.f32 %v234_v52, %v233_v51 }
 0x506   :  { %306 = vpush %v235_v53 }
 0x537   :  { %s307_s24 = spop %306 }
 0x538   :  { %v237_v54 = vstv %s307_s24 }
 0x539   :  { %322 = vrcp.f32 %v237_v54 }
 0x543   :  { %v323_v55 = vpop.eup %322 }
 0x544   :  { %308 = vpush %v323_v55 }
 0x575   :  { %s309_s25 = spop %308 }
 0x576   :  { %v240_v56 = vstv %s309_s25 }
 0x577   :  { %v241_v57 = vmul.f32 %v240_v56, %v409_v0 }
 0x579   :  { %242 = vst.msk [vmem:[%s463_s3] sm:$0xff] %vm122_vm3, %v241_v57 }
 0x57a   :  { %368 = dma.done.wait [#allocation3], 16  }
 0x57b   :  { %369 = vsyncadd [#allocation3], 4294967280 }
 0x57c   :  { %370 = dma.done.wait [#allocation5], 16  }
 0x57d   :  { %371 = vsyncadd [#allocation5], 4294967280 }
 0x57e   :  { %275 = vsyncpa [#allocation3], 1 }
 0x57f   :  { %276 = vsyncpa [#allocation5], 1 }

// kernel: spectral_norm_conv2d.3
= control target key start
LH: loop header
LB: loop body
LE: loop exit
PB: predicated region body
PF: predicated region fallthrough
CT: control target
= control target key end

     0   :  { %s472_s12 = smov 0   ;;  %s474_s13 = smov 0   ;;  %s530_s0 = inlined_call_operand.vmem [shape: f32[8,36], index: 0, kind: input, shape index: {}]   ;;  %s531_s1 = inlined_call_operand.vmem [shape: f32[8,1], index: 1, kind: input, shape index: {}]   ;;  %s532_s2 = inlined_call_operand.vmem [shape: f32[36,512], index: 2, kind: input, shape index: {}]   ;;  %s533_s3 = inlined_call_operand.vmem [shape: f32[8,512], index: 3, kind: output, shape index: {}]  }
   0x1   :  { %s476_s14 = smov 0  }
   0x2 LB: > { %s374_s15 = sadd.s32 4294967295, %s448_s14   ;;  %s489_s16 = sadd.s32 1, %s448_s14   ;;  %s448_s14 = sphi %s476_s14, %s536_s14   ;;  %s444_s13 = sphi %s474_s13, %s535_s13   ;;  %s440_s12 = sphi %s472_s12, %s534_s12  }
   0x3   : > { %s59_s17 = ssub.s32 %s448_s14, %s489_s16  ;;  %s62_s18 = sadd.s32 1, %s444_s13 }
   0x4   : > { %p60_p0 = scmp.eq.s32.totalorder %s59_s17, 0  ;;  %p69_p1 = scmp.ne.s32.totalorder %s444_s13, %s440_s12 }
   0x5   : > { %p70_p2 = scmp.eq.s32.totalorder %s448_s14, 0  ;;  %p377_p4 = scmp.ge.s32.totalorder %s448_s14, 2 }
   0x6   : > { %s498_s19 = scalar_select %p60_p0, %s444_s13, %s62_s18  }
   0x7   : > { %p71_p3 = por %p70_p2, %p69_p1  ;;  %127 = sbr.rel (%p377_p4) target bundleno = 23 (0x17), region = 24 }
   0xe   : > { %130 = sbr.rel (!%p71_p3) target bundleno = 23 (0x17), region = 28  ;;  %s132_s20 = sand.u32 (%p71_p3), 1, %s444_s13  }
   0xf   : > { %s388_s21 = sshll.u32 (%p71_p3), %s448_s14, 4  ;;  %s397_s22 = smul.u32 (%p71_p3), 80, %s132_s20 }
  0x10   : > { %s137_s25 = scalar_lea.vmem (%p71_p3), %s532_s2, %s388_s21 }
  0x11   : > { %v150_v0 = vld [vmem:[%s137_s25] sm:$0xff] (%p71_p3)  ;;  %v152_v1 = vld [vmem:[%s137_s25 + $0x8] sm:$0xff] (%p71_p3)  ;;  %s134_s26 = scalar_lea.vmem (%p71_p3), [#allocation2], %s397_s22 }
  0x12   : > { %v154_v2 = vld [vmem:[%s137_s25 + $0x20] sm:$0xff] (%p71_p3)  ;;  %v156_v3 = vld [vmem:[%s137_s25 + $0x28] sm:$0xff] (%p71_p3)  ;;  %151 = vst [vmem:[%s134_s26] sm:$0xff] (%p71_p3), %v150_v0  ;;  %153 = vst [vmem:[%s134_s26 + $0x8] sm:$0xff] (%p71_p3), %v152_v1 }
  0x13   : > { %v158_v4 = vld [vmem:[%s137_s25 + $0x40] sm:$0xff] (%p71_p3)  ;;  %v160_v5 = vld [vmem:[%s137_s25 + $0x48] sm:$0xff] (%p71_p3)  ;;  %155 = vst [vmem:[%s134_s26 + $0x10] sm:$0xff] (%p71_p3), %v154_v2  ;;  %157 = vst [vmem:[%s134_s26 + $0x18] sm:$0xff] (%p71_p3), %v156_v3 }
  0x14   : > { %159 = vst [vmem:[%s134_s26 + $0x20] sm:$0xff] (%p71_p3), %v158_v4  ;;  %161 = vst [vmem:[%s134_s26 + $0x28] sm:$0xff] (%p71_p3), %v160_v5  ;;  %v162_v6 = vld [vmem:[%s137_s25 + $0x60] sm:$0xff] (%p71_p3)  ;;  %v164_v7 = vld [vmem:[%s137_s25 + $0x68] sm:$0xff] (%p71_p3) }
  0x15   : > { %v166_v8 = vld [vmem:[%s137_s25 + $0x80] sm:$0xff]  ;;  %163 = vst [vmem:[%s134_s26 + $0x30] sm:$0xff] %v162_v6  ;;  %165 = vst [vmem:[%s134_s26 + $0x38] sm:$0xff] %v164_v7  ;;  %v168_v9 = vld [vmem:[%s137_s25 + $0x88] sm:$0xff] }
  0x16   : > { %167 = vst [vmem:[%s134_s26 + $0x40] sm:$0xff] %v166_v8  ;;  %169 = vst [vmem:[%s134_s26 + $0x48] sm:$0xff] %v168_v9 }
  0x17 PF: > { %p380_p5 = scmp.ge.s32.totalorder %s448_s14, 1  ;;  %p174_p6 = scmp.lt.s32.totalorder %s448_s14, 3 }
  0x19   : > { %p175_p7 = pnand %p380_p5, %p174_p6 }
  0x1a   : > { %s181_s27 = sand.u32 (!%p175_p7), 1, %s440_s12   ;;  %v450_v10 = vmov (!%p175_p7), 0.0   ;;  %v451_v11 = vmov (!%p175_p7), 0   ;;  %v222_v12 = vld [vmem:[%s531_s1] sm:$0xff] (!%p175_p7)  ;;  %vm232_vm0 = vcmask (!%p175_p7), 1043456   ;;  %vm228_vm1 = vcmask (!%p175_p7), 293888  }
  0x1b   : > { %178 = sbr.rel (%p175_p7) target bundleno = 260 (0x104), region = 51  ;;  %303 = vmatprep.mubr.f32.mxu0 (!%p175_p7), %v450_v10  ;;  %425 = vset.pattern.permute.xlu0 (!%p175_p7), %v451_v11  ;;  %v211_v27 = vld [vmem:[%s530_s0] sm:$0xff] (!%p175_p7)  ;;  %s381_s7 = sshll.u32 (!%p175_p7), %s374_s15, 1 }
  0x1c   : > { %s398_s28 = smul.u32 (!%p175_p7), 80, %s181_s27  ;;  %225 = vperm.xlu0 (!%p175_p7), %425, %v222_v12   ;;  %p206_p8 = scmp.lt.s32.totalorder (!%p175_p7), %s381_s7, 3 }
  0x1e   : > { %s183_s4 = scalar_lea.vmem (!%p175_p7), [#allocation2], %s398_s28 }
  0x1f   : > { %v213_v13 = vld [vmem:[%s183_s4 + $0x8] sm:$0xff] (!%p175_p7)  ;;  %v215_v14 = vld [vmem:[%s183_s4 + $0x18] sm:$0xff] (!%p175_p7)  ;;  %v212_v15 = vld [vmem:[%s183_s4] sm:$0xff] (!%p175_p7) }
  0x20   : > { %v389_v16 = vpack.c.bf16 (!%p175_p7), %v215_v14, %v213_v13  ;;  %v214_v17 = vld [vmem:[%s183_s4 + $0x10] sm:$0xff] (!%p175_p7)  ;;  %v217_v18 = vld [vmem:[%s183_s4 + $0x28] sm:$0xff] (!%p175_p7)  ;;  %v219_v19 = vld [vmem:[%s183_s4 + $0x38] sm:$0xff] (!%p175_p7) }
  0x21   : > { %v391_v20 = vpack.c.bf16 (!%p175_p7), %v214_v17, %v212_v15  ;;  %v393_v21 = vpack.c.bf16 (!%p175_p7), %v219_v19, %v217_v18  ;;  %v216_v22 = vld [vmem:[%s183_s4 + $0x20] sm:$0xff] (!%p175_p7)  ;;  %v218_v23 = vld [vmem:[%s183_s4 + $0x30] sm:$0xff] (!%p175_p7)  ;;  %v221_v25 = vld [vmem:[%s183_s4 + $0x48] sm:$0xf] (!%p175_p7) }
  0x22   : > { %390 = vmatprep.subr.bf16.mxu0 %v389_v16  ;;  %v395_v24 = vpack.c.bf16 %v218_v23, %v216_v22  ;;  %v220_v26 = vld [vmem:[%s183_s4 + $0x40] sm:$0xf]  ;;  %s538_s7 = smov (!%p206_p8, %s381_s7), 3 }
  0x23   : > { %392 = vmatpush1.bf16.msra.mxu0 %v391_v20  ;;  %s382_s8 = sshll.u32 %s538_s7, 3 }
  0x24   : > { %394 = vmatprep.subr.bf16.mxu0 %v393_v21  ;;  %s209_s11 = scalar_lea.vmem %s533_s3, %s382_s8 }
  0x27   : > { %396 = vmatpush1.bf16.msra.mxu0 %v395_v24 }
  0x28   : > { %383 = vmatprep.subr.msk.mxu0 %vm232_vm0, %v221_v25 }
  0x2b   : > { %384 = vmatpush1.msk.msra.mxu0 %vm232_vm0, %v220_v26 }
  0x2c   : > { %385 = vmatmul.mubr.msk.f32.vlgmr.msra.gmra.mrb[0].mxu0 %vm228_vm1, %v211_v27 }
  0x9b   : > { %v226_v28 = vpop.permute.xlu0 %225 }
  0xff   : > { %v305_v29 = vpop.f32.mrb[0].mxu0 }
 0x100   : > { %v306_v30 = vadd.f32 %v305_v29, %v226_v28  ;;  %v307_v31 = vpop.f32.mrb[1].mxu0 }
 0x101   : > { %v308_v32 = vadd.f32 %v307_v31, %v226_v28 }
 0x102   : > { %310 = vst [vmem:[%s209_s11] sm:$0xff] %v306_v30 }
 0x103   : > { %311 = vst [vmem:[%s209_s11 + $0x8] sm:$0xff] %v308_v32 }
 0x104 PF: > { %p10_p9 = scmp.ge.s32.totalorder %s489_s16, 4   ;;  %s534_s12 = smov %s444_s13 }
 0x105   : > { %s535_s13 = smov %s498_s19  ;;  %s536_s14 = smov %s489_s16 }
 0x106   :  { %12 = sbr.rel (!%p10_p9) target bundleno = 2 (0x2), region = 90 }

</bundles_post_ra>
